<compile_context>
chip_gen: v6e
topology: v6e:2x2x1
jax: 0.10.0
libtpu: 0.0.40
codegen_flags: <defaults>
</compile_context>

<pallas_src>
import math
from typing import NamedTuple

import jax
import jax.numpy as jnp
from jax.experimental import pallas as pl
from jax.experimental.pallas import tpu as pltpu


def _round_up(x: int, m: int) -> int:
    return (x + m - 1) // m * m


def _cdiv(a: int, b: int) -> int:
    return (a + b - 1) // b


# --------------------------- kernels -----------------------------------------


def _ff_kernel_resident(x_ref, w_in_t_ref, b_in_ref, w_out_ref, o_ref):
    # x_ref:      (TILE_N, D_in_p) pipelined;  weights/bias: whole-array VMEM
    h = jnp.dot(x_ref[...], w_in_t_ref[...], preferred_element_type=jnp.float32)
    h = jnp.maximum(h + b_in_ref[...].astype(jnp.float32), 0.0)
    out = jnp.dot(h.astype(w_out_ref.dtype), w_out_ref[...],
                  preferred_element_type=jnp.float32)
    o_ref[...] = out.astype(o_ref.dtype)


def _ff_kernel_ktiled(x_ref, w_in_t_ref, b_in_ref, w_out_ref, o_ref, acc_ref):
    # Grid = (token tiles, hidden tiles).  acc_ref: (TILE_N, D_out_p) f32.
    k = pl.program_id(1)

    @pl.when(k == 0)
    def _init():
        acc_ref[...] = jnp.zeros_like(acc_ref)

    h = jnp.dot(x_ref[...], w_in_t_ref[...], preferred_element_type=jnp.float32)
    h = jnp.maximum(h + b_in_ref[...].astype(jnp.float32), 0.0)
    acc_ref[...] += jnp.dot(h.astype(w_out_ref.dtype), w_out_ref[...],
                            preferred_element_type=jnp.float32)

    @pl.when(k == pl.num_programs(1) - 1)
    def _finalize():
        o_ref[...] = acc_ref[...].astype(o_ref.dtype)


# --------------------------- parameter prep (one-time) -----------------------


class PreparedFFParams(NamedTuple):
    w_in_t: jax.Array      # (D_in_p, H_p)  == padded in_weight.T
    b_in: jax.Array        # (1, H_p)
    w_out: jax.Array       # (H_p, D_out_p)
    input_width: int
    hidden_width: int
    output_width: int


def prepare_ff_params(in_weight, in_bias, out_weight) -> PreparedFFParams:
    """One-time transpose + zero-pad of the FF weights to lane-aligned shapes.

    Zero padding is exact: padded input columns hit zero weight rows, padded
    hidden units get zero weight+bias so relu(0)=0, and padded output columns
    are sliced off by the wrapper.
    """
    hidden_width, input_width = in_weight.shape
    output_width = out_weight.shape[1]
    d_in_p = _round_up(input_width, 128)
    h_p = _round_up(hidden_width, 128)
    d_out_p = _round_up(output_width, 128)

    if (d_in_p, h_p) == (input_width, hidden_width):
        w_in_t = in_weight.T
    else:
        w_in_t = (jnp.zeros((d_in_p, h_p), in_weight.dtype)
                  .at[:input_width, :hidden_width].set(in_weight.T))
    if h_p == hidden_width:
        b_in = in_bias.reshape(1, h_p)
    else:
        b_in = jnp.zeros((1, h_p), in_bias.dtype).at[0, :hidden_width].set(in_bias)
    if (h_p, d_out_p) == (hidden_width, output_width):
        w_out = out_weight
    else:
        w_out = (jnp.zeros((h_p, d_out_p), out_weight.dtype)
                 .at[:hidden_width, :output_width].set(out_weight))
    return PreparedFFParams(w_in_t, b_in, w_out,
                            input_width, hidden_width, output_width)


# --------------------------- VMEM budget & tiling -----------------------------


def _vmem_budget():
    """(vmem_limit_bytes, allocation_budget_bytes), conservative across gens."""
    try:
        cap = int(pltpu.get_tpu_info().vmem_capacity_bytes)
    except Exception:
        cap = 64 * 1024 * 1024          # v7x per-TC VMEM (smallest physical)
    cap = min(cap, 128 * 1024 * 1024)
    # Leave headroom for compiler-internal scratch; never exceed 64 MiB so a
    # v7x TC (64 MiB physical) is always safe.
    vmem_limit = min(int(cap * 3 // 4), 64 * 1024 * 1024)
    budget = vmem_limit * 4 // 5
    return vmem_limit, budget


def _choose_tiling(n, d_in_p, h_p, d_out_p, x_itemsize, w_itemsize, budget,
                   force_k_tiling=False, max_tile_h=None):
    """Returns (k_tiled, tile_h, tile_n, num_n_tiles)."""
    weights_bytes = (d_in_p * h_p + h_p + h_p * d_out_p) * w_itemsize
    k_tiled = bool(force_k_tiling) or weights_bytes > budget // 4

    tile_h = h_p
    tile_n_cap = 8
    if not k_tiled:
        remaining = budget - weights_bytes
        per_row = (2 * d_in_p * x_itemsize      # double-buffered x tile
                   + 2 * d_out_p * x_itemsize   # double-buffered out tile
                   + h_p * 4)                   # f32 hidden intermediate
        cap = (remaining // per_row) // 8 * 8
        if cap < 8:
            k_tiled = True                      # weights fit but tiles don't
        else:
            tile_n_cap = min(cap, 4096)

    if k_tiled:
        # Double-buffered weight tiles sized to ~budget/4.
        per_h = 2 * (d_in_p + 1 + d_out_p) * w_itemsize
        target = max(128, (budget // 4 // max(per_h, 1)) // 128 * 128)
        if max_tile_h is not None:
            target = min(target, max_tile_h)
        target = max(128, min(target, h_p))
        # Largest multiple of 128 that divides h_p and is <= target
        # (avoids extra hidden-dim padding).
        m = h_p // 128
        t = target // 128
        while t > 1 and m % t != 0:
            t -= 1
        tile_h = 128 * t
        remaining = budget - 2 * (d_in_p * tile_h + tile_h + tile_h * d_out_p) * w_itemsize
        per_row = (2 * d_in_p * x_itemsize + 2 * d_out_p * x_itemsize
                   + d_out_p * 4                # f32 accumulator scratch
                   + tile_h * 4)                # f32 hidden intermediate
        tile_n_cap = max(8, min(4096, (max(remaining, 0) // per_row) // 8 * 8))

    # Split N into near-equal tiles (minimizes padded rows vs. rounding n up
    # to a full max-size tile).
    num_tiles = max(1, _cdiv(n, tile_n_cap))
    tile_n = _round_up(_cdiv(n, num_tiles), 8)
    if num_tiles == 1 and n > 8:
        # >= 2 grid steps so a 2-TC chip (v7x) can shard the parallel axis.
        num_tiles = 2
        tile_n = _round_up(_cdiv(n, 2), 8)
    return k_tiled, tile_h, tile_n, num_tiles


# --------------------------- forward ------------------------------------------


def ff_forward_prepared(x, params: PreparedFFParams, *,
                        force_k_tiling=False, max_tile_h=None):
    """FFFunction.forward with pre-prepared (transposed/padded) weights."""
    w_in_t, b_in, w_out = params.w_in_t, params.b_in, params.w_out
    input_width = params.input_width
    output_width = params.output_width
    d_in_p, h_p = w_in_t.shape
    d_out_p = w_out.shape[1]

    assert x.shape[-1] == input_width, (x.shape, input_width)
    # reshape_as(oldx) in the reference silently requires this:
    assert output_width == input_width, (output_width, input_width)

    orig_shape = x.shape
    x2d = x.reshape(-1, input_width)
    n = x2d.shape[0]
    dtype = x2d.dtype
    x_itemsize = jnp.dtype(dtype).itemsize
    w_itemsize = jnp.dtype(w_in_t.dtype).itemsize

    vmem_limit, budget = _vmem_budget()
    k_tiled, tile_h, tile_n, num_tiles = _choose_tiling(
        n, d_in_p, h_p, d_out_p, x_itemsize, w_itemsize, budget,
        force_k_tiling=force_k_tiling, max_tile_h=max_tile_h)
    n_p = tile_n * num_tiles

    # Skip the activation pad-copy pass entirely when already aligned.
    if n_p == n and d_in_p == input_width:
        x_p = x2d
    else:
        x_p = jnp.zeros((n_p, d_in_p), dtype).at[:n, :input_width].set(x2d)

    if not k_tiled:
        grid = (num_tiles,)
        in_specs = [
            pl.BlockSpec((tile_n, d_in_p), lambda i: (i, 0)),
            # Whole-array VMEM residents: single-buffered, fetched once.
            pl.BlockSpec(memory_space=pltpu.MemorySpace.VMEM),
            pl.BlockSpec(memory_space=pltpu.MemorySpace.VMEM),
            pl.BlockSpec(memory_space=pltpu.MemorySpace.VMEM),
        ]
        out_specs = pl.BlockSpec((tile_n, d_out_p), lambda i: (i, 0))
        scratch_shapes = []
        kernel = _ff_kernel_resident
        dims = ("parallel",)
        w_reads = 1
    else:
        num_k = h_p // tile_h
        grid = (num_tiles, num_k)
        in_specs = [
            pl.BlockSpec((tile_n, d_in_p), lambda i, k: (i, 0)),
            pl.BlockSpec((d_in_p, tile_h), lambda i, k: (0, k)),
            pl.BlockSpec((1, tile_h), lambda i, k: (0, k)),
            pl.BlockSpec((tile_h, d_out_p), lambda i, k: (k, 0)),
        ]
        out_specs = pl.BlockSpec((tile_n, d_out_p), lambda i, k: (i, 0))
        scratch_shapes = [pltpu.VMEM((tile_n, d_out_p), jnp.float32)]
        kernel = _ff_kernel_ktiled
        dims = ("parallel", "arbitrary")
        w_reads = num_tiles  # weight tiles re-streamed once per token tile

    flops = 2 * n_p * h_p * (d_in_p + d_out_p)
    bytes_accessed = (x_p.size * x_itemsize
                      + w_reads * (w_in_t.size + b_in.size + w_out.size) * w_itemsize
                      + n_p * d_out_p * x_itemsize)

    out = pl.pallas_call(
        kernel,
        out_shape=jax.ShapeDtypeStruct((n_p, d_out_p), dtype),
        grid_spec=pltpu.PrefetchScalarGridSpec(
            num_scalar_prefetch=0,
            grid=grid,
            in_specs=in_specs,
            out_specs=out_specs,
            scratch_shapes=scratch_shapes,
        ),
        compiler_params=pltpu.CompilerParams(
            dimension_semantics=dims,
            vmem_limit_bytes=vmem_limit),
        cost_estimate=pl.CostEstimate(
            flops=flops, transcendentals=0, bytes_accessed=bytes_accessed),
    )(x_p, w_in_t, b_in, w_out)

    if n_p != n or d_out_p != output_width:
        out = out[:n, :output_width]
    return out.reshape(orig_shape)


def ff_forward(x, in_weight, in_bias, out_weight, **kwargs):
    """Convenience path: prepares (transposes/pads) the weights every call.
    Prefer prepare_ff_params(...) once + ff_forward_prepared(...) per call."""
    return ff_forward_prepared(x, prepare_ff_params(in_weight, in_bias, out_weight),
                               **kwargs)


# --------------------------- init helper & self-test --------------------------


def make_ff_params(key, input_width, hidden_width, output_width,
                   dtype=jnp.float32):
    """Deterministic init matching FF.reset_parameters ranges."""
    k1, k2, k3 = jax.random.split(key, 3)
    init_k = math.sqrt(1.0 / input_width)
    init_k2 = math.sqrt(1.0 / hidden_width)
    in_weight = jax.random.uniform(k1, (hidden_width, input_width),
                                   dtype, -init_k, init_k)
    in_bias = jax.random.uniform(k2, (hidden_width,), dtype, -init_k, init_k)
    out_weight = jax.random.uniform(k3, (hidden_width, output_width),
                                    dtype, -init_k2, init_k2)
    return in_weight, in_bias, out_weight


def _reference(x, in_weight, in_bias, out_weight):
    x2d = x.reshape(-1, in_weight.shape[1])
    ref = jnp.maximum(x2d @ in_weight.T + in_bias, 0.0) @ out_weight
    return ref.reshape(x.shape)


if __name__ == "__main__":
    key = jax.random.PRNGKey(0)

    # ---- Test 1: small unaligned shapes (resident-weight path, pad path) ----
    input_width, hidden_width, output_width = 32, 64, 32
    kp, kx, key = jax.random.split(key, 3)
    in_w, in_b, out_w = make_ff_params(kp, input_width, hidden_width, output_width)
    x = jax.random.normal(kx, (2, 8, input_width), dtype=jnp.float32)

    params = prepare_ff_params(in_w, in_b, out_w)   # one-time weight prep
    out = jax.block_until_ready(ff_forward_prepared(x, params))
    assert out.shape == x.shape, (out.shape, x.shape)
    ref = _reference(x, in_w, in_b, out_w)
    assert jnp.allclose(out, ref, atol=1e-4, rtol=1e-4), float(
        jnp.max(jnp.abs(out - ref)))

    # ---- Test 2: lane-aligned shapes, K-tiled accumulator path ----
    input_width, hidden_width, output_width = 128, 512, 128
    kp, kx = jax.random.split(key)
    in_w, in_b, out_w = make_ff_params(kp, input_width, hidden_width, output_width)
    x = jax.random.normal(kx, (2, 16, input_width), dtype=jnp.float32)

    params = prepare_ff_params(in_w, in_b, out_w)
    out = jax.block_until_ready(
        ff_forward_prepared(x, params, force_k_tiling=True, max_tile_h=128))
    assert out.shape == x.shape, (out.shape, x.shape)
    ref = _reference(x, in_w, in_b, out_w)
    assert jnp.allclose(out, ref, atol=1e-4, rtol=1e-4), float(
        jnp.max(jnp.abs(out - ref)))

    # Convenience (unprepared) entry point still works.
    out2 = jax.block_until_ready(ff_forward(x, in_w, in_b, out_w))
    assert jnp.allclose(out2, ref, atol=1e-4, rtol=1e-4)

    print("KERNEL_OK")
</pallas_src>

<mosaic_0001>
module attributes {stable_mosaic.version = 11 : i64} {
  func.func @_ff_kernel_resident(%arg0: i32, %arg1: memref<8x128xf32, #tpu.memory_space<vmem>>, %arg2: memref<128x128xf32, #tpu.memory_space<vmem>>, %arg3: memref<1x128xf32, #tpu.memory_space<vmem>>, %arg4: memref<128x128xf32, #tpu.memory_space<vmem>>, %arg5: memref<8x128xf32, #tpu.memory_space<vmem>>) attributes {dimension_semantics = [#tpu.dimension_semantics<parallel>], iteration_bounds = array<i64: 2>, scalar_prefetch = 0 : i64, scratch_operands = 0 : i64, tpu.core_type = #tpu.core_type<tc>, window_params = [{transform_indices = @transform_0, window_bounds = array<i64: 8, 128>}, {pipeline_mode = #tpu.pipeline_mode<synchronous>, transform_indices = @transform_1, window_bounds = array<i64: 128, 128>}, {pipeline_mode = #tpu.pipeline_mode<synchronous>, transform_indices = @transform_2, window_bounds = array<i64: 1, 128>}, {pipeline_mode = #tpu.pipeline_mode<synchronous>, transform_indices = @transform_3, window_bounds = array<i64: 128, 128>}, {transform_indices = @transform_4, window_bounds = array<i64: 8, 128>}]} {
    %c0 = arith.constant 0 : index
    %c0_0 = arith.constant 0 : index
    %0 = vector.load %arg1[%c0, %c0_0] : memref<8x128xf32, #tpu.memory_space<vmem>>, vector<8x128xf32>
    %c0_1 = arith.constant 0 : index
    %c0_2 = arith.constant 0 : index
    %1 = vector.load %arg2[%c0_1, %c0_2] : memref<128x128xf32, #tpu.memory_space<vmem>>, vector<128x128xf32>
    %cst = arith.constant dense<0.000000e+00> : vector<8x128xf32>
    %2 = tpu.matmul %0, %1, %cst {dimension_numbers = #tpu.dot_dimension_numbers<[1], [0], [0], [1], [0, 0, 1, 1], [], []>} : vector<8x128xf32>, vector<128x128xf32>, vector<8x128xf32> -> vector<8x128xf32>
    %c0_3 = arith.constant 0 : index
    %c0_4 = arith.constant 0 : index
    %3 = vector.load %arg3[%c0_3, %c0_4] : memref<1x128xf32, #tpu.memory_space<vmem>>, vector<1x128xf32>
    %4 = vector.broadcast %3 : vector<1x128xf32> to vector<8x128xf32>
    %5 = arith.addf %2, %4 : vector<8x128xf32>
    %cst_5 = arith.constant 0.000000e+00 : f32
    %6 = vector.broadcast %cst_5 : f32 to vector<8x128xf32>
    %7 = arith.maximumf %5, %6 : vector<8x128xf32>
    %c0_6 = arith.constant 0 : index
    %c0_7 = arith.constant 0 : index
    %8 = vector.load %arg4[%c0_6, %c0_7] : memref<128x128xf32, #tpu.memory_space<vmem>>, vector<128x128xf32>
    %cst_8 = arith.constant dense<0.000000e+00> : vector<8x128xf32>
    %9 = tpu.matmul %7, %8, %cst_8 {dimension_numbers = #tpu.dot_dimension_numbers<[1], [0], [0], [1], [0, 0, 1, 1], [], []>} : vector<8x128xf32>, vector<128x128xf32>, vector<8x128xf32> -> vector<8x128xf32>
    %c0_9 = arith.constant 0 : index
    %c0_10 = arith.constant 0 : index
    %10 = vector.load %arg5[%c0_9, %c0_10] : memref<8x128xf32, #tpu.memory_space<vmem>>, vector<8x128xf32>
    tpu.vector_store %arg5[%c0_9, %c0_10], %9 {strides = array<i32>} : memref<8x128xf32, #tpu.memory_space<vmem>>, vector<8x128xf32>,
    return
  }
  func.func @transform_0(%arg0: i32) -> (i32, i32) {
    %c0_i32 = arith.constant 0 : i32
    %c0_i32_0 = arith.constant 0 : i32
    return %arg0, %c0_i32 : i32, i32
  }
  func.func @transform_1(%arg0: i32) -> (i32, i32) {
    %c0_i32 = arith.constant 0 : i32
    %c0_i32_0 = arith.constant 0 : i32
    %c0_i32_1 = arith.constant 0 : i32
    return %c0_i32, %c0_i32_0 : i32, i32
  }
  func.func @transform_2(%arg0: i32) -> (i32, i32) {
    %c0_i32 = arith.constant 0 : i32
    %c0_i32_0 = arith.constant 0 : i32
    %c0_i32_1 = arith.constant 0 : i32
    return %c0_i32, %c0_i32_0 : i32, i32
  }
  func.func @transform_3(%arg0: i32) -> (i32, i32) {
    %c0_i32 = arith.constant 0 : i32
    %c0_i32_0 = arith.constant 0 : i32
    %c0_i32_1 = arith.constant 0 : i32
    return %c0_i32, %c0_i32_0 : i32, i32
  }
  func.func @transform_4(%arg0: i32) -> (i32, i32) {
    %c0_i32 = arith.constant 0 : i32
    %c0_i32_0 = arith.constant 0 : i32
    return %arg0, %c0_i32 : i32, i32
  }
}

</mosaic_0001>

<bundles_post_ra>
// kernel: tpu_custom_call.1
= control target key start
LH: loop header
LB: loop body
LE: loop exit
PB: predicated region body
PF: predicated region fallthrough
CT: control target
= control target key end

     0   :  { %9 = vsyncpa [#allocation3], 0  ;;  %s1123_s0 = inlined_call_operand.hbm [shape: f32[16,128], index: 0, kind: input, shape index: {}]   ;;  %s1124_s1 = inlined_call_operand.hbm [shape: f32[128,128], index: 1, kind: input, shape index: {}]   ;;  %s1125_s2 = inlined_call_operand.vmem [shape: f32[1,128], index: 2, kind: input, shape index: {}]   ;;  %s1126_s3 = inlined_call_operand.hbm [shape: f32[128,128], index: 3, kind: input, shape index: {}]   ;;  %s1127_s4 = inlined_call_operand.hbm [shape: f32[16,128], index: 4, kind: output, shape index: {}]  }
   0x1   :  { %11 = vsyncpa [#allocation3 + $0x1], 0 }
   0x2   :  { %12 = vsyncpa [#allocation6], 0 }
   0x3   :  { %13 = vsyncpa [#allocation4], 0 }
   0x4   :  { %15 = vsyncpa [#allocation4 + $0x1], 0  ;;  %s902_s15 = smov 0   ;;  %s904_s16 = smov 0  }
   0x5   :  { %s906_s17 = smov 0   ;;  %s908_s18 = smov 0  }
   0x6 LB: > { %s923_s19 = sadd.s32 4294967295, %s867_s18   ;;  %s527_s20 = sadd.s32 4294967294, %s867_s18   ;;  %s867_s18 = sphi %s908_s18, %s1149_s18   ;;  %s863_s17 = sphi %s906_s17, %s1148_s17   ;;  %s859_s16 = sphi %s904_s16, %s1147_s16   ;;  %s855_s15 = sphi %s902_s15, %s1146_s15  }
   0x7   : > { %p41_p0 = scmp.ne.s32.totalorder %s859_s16, %s855_s15  ;;  %p1128_p1 = scmp.eq.s32.totalorder %s923_s19, 0 }
   0x8   : > { %p134_p3 = scmp.eq.s32.totalorder %s527_s20, 1  ;;  %p528_p5 = scmp.ge.s32.totalorder %s867_s18, 1 }
   0x9   : > { %p932_p4 = por %p1128_p1, %p41_p0  ;;  %p141_p7 = scmp.lt.s32.totalorder %s867_s18, 3 }
   0xa   : > { %p937_p6 = por %p134_p3, %p41_p0  ;;  %s869_s24 = smov [#allocation5]  }
   0xb   : > { %s1132_s21 = scalar_select %p932_p4, 1, 0 }
   0xc   : > { %s1133_s22 = scalar_select %p937_p6, 1, 0 }
   0xd   : > { %p942_p8 = pnand %p528_p5, %p141_p7  ;;  %s153_s25 = sshll.u32 %s869_s24, 4  ;;  %s154_s25 = int_to_ptr.vmem [resolvable:$true] %s153_s25 }
   0xe   : > { %s870_s27 = smov [#allocation7]   ;;  %s730_s29 = scalar_lea.vmem %s154_s25, 2048 }
   0xf   : > { %s1134_s23 = scalar_select %p942_p8, 1, 0 }
  0x10   : > { %p660_p9 = pneg %p942_p8  ;;  %s169_s28 = sshll.u32 %s870_s27, 4  ;;  %s170_s28 = int_to_ptr.vmem [resolvable:$true] %s169_s28 }
  0x11   : > { %p731_p13 = scmp.ne.s32.totalorder %s154_s25, %s730_s29  ;;  %p738_p5 = scmp.lt.s32.totalorder %s154_s25, %s154_s25 }
  0x12   : > { %p951_p11 = pnand %p660_p9, %p1128_p1  ;;  %p739_p7 = scmp.lt.s32.totalorder %s730_s29, %s730_s29 }
  0x14   : > { %p721_p12 = pneg %p951_p11  ;;  %p740_p10 = por %p739_p7, %p738_p5 }
  0x16   : > { %p733_p0 = pnand %p731_p13, %p721_p12 }
  0x18   : > { %p734_p3 = pneg %p733_p0 }
  0x1a   : > { %p741_p9 = pnand %p740_p10, %p734_p3 }
  0x1c   : > { %744 = shalt.err (!%p741_p9)
}
  0x1d   : > { %s871_s30 = smov 128   ;;  %s872_s5 = smov 8  }
  0x1e   : > { %663 = dma.hbm_to_vmem [thread:$0]  (!%p951_p11), %s1124_s1, 2048, %s154_s25, [#allocation6], %s871_s30, %s871_s30, %s872_s5  }
  0x1f   : > { %s756_s8 = scalar_lea.vmem %s170_s28, 2048  ;;  %p764_p2 = scmp.lt.s32.totalorder %s170_s28, %s170_s28 }
  0x20   : > { %p757_p1 = scmp.ne.s32.totalorder %s170_s28, %s756_s8  ;;  %p765_p6 = scmp.lt.s32.totalorder %s756_s8, %s756_s8 }
  0x22   : > { %p759_p13 = pnand %p757_p1, %p721_p12  ;;  %p766_p5 = por %p765_p6, %p764_p2 }
  0x24   : > { %p760_p0 = pneg %p759_p13 }
  0x26   : > { %p767_p10 = pnand %p766_p5, %p760_p0 }
  0x28   : > { %770 = shalt.err (!%p767_p10)
}
  0x29   : > { %666 = dma.hbm_to_vmem [thread:$0]  (!%p951_p11), %s1126_s3, 2048, %s170_s28, [#allocation6], %s871_s30, %s871_s30, %s872_s5  }
  0x2a   : > { %s974_s11 = sadd.s32 1, %s867_s18   ;;  %s28_s12 = sadd.s32 1, %s863_s17 }
  0x2b   : > { %s25_s13 = ssub.s32 %s867_s18, %s974_s11  ;;  %p35_p1 = scmp.ne.s32.totalorder %s863_s17, %s859_s16 }
  0x2c   : > { %p26_p2 = scmp.eq.s32.totalorder %s25_s13, 0  ;;  %p36_p6 = scmp.eq.s32.totalorder %s867_s18, 0 }
  0x2d   : > { %p1136_p12 = scmp.eq.s32.totalorder %s923_s19, 1  ;;  %p677_p7 = scmp.lt.s32.totalorder %s867_s18, 2 }
  0x2e   : > { %s990_s20 = scalar_select %p26_p2, %s863_s17, %s28_s12  }
  0x2f   : > { %p984_p3 = por %p1136_p12, %p35_p1  ;;  %p37_p9 = por %p36_p6, %p35_p1 }
  0x30   : > { %s183_s24 = sand.u32 1, %s863_s17   ;;  %s533_s26 = sshll.u32 %s867_s18, 7 }
  0x31   : > { %s1137_s14 = scalar_select %p984_p3, 1, 0 }
  0x32   : > { %s532_s25 = sshll.u32 %s183_s24, 3  ;;  %s997_s29 = scalar_lea.hbm %s1123_s0, %s533_s26 }
  0x33   : > { %s187_s30 = scalar_lea.vmem [#allocation2], %s532_s25  ;;  %p999_p11 = pnand %p677_p7, %p37_p9 }
  0x34   : > { %s194_s5 = sshll.u32 %s187_s30, 4  ;;  %s184_s7 = scalar_lea.sflag [#allocation3], %s183_s24  ;;  %s195_s5 = int_to_ptr.vmem [resolvable:$true] %s194_s5 }
  0x35   : > { %s771_s8 = scalar_lea.hbm %s997_s29, 128  ;;  %p773_p0 = pneg %p999_p11 }
  0x36   : > { %p772_p13 = scmp.ne.s32.totalorder %s997_s29, %s771_s8  ;;  %s776_s12 = scalar_lea.hbm %s1123_s0, 256 }
  0x37   : > { %p777_p1 = scmp.lt.s32.totalorder %s997_s29, %s1123_s0  ;;  %p778_p2 = scmp.lt.s32.totalorder %s776_s12, %s771_s8 }
  0x38   : > { %p774_p5 = pnand %p773_p0, %p772_p13 }
  0x39   : > { %p779_p6 = por %p778_p2, %p777_p1 }
  0x3a   : > { %p775_p10 = pneg %p774_p5 }
  0x3c   : > { %p780_p12 = pnand %p779_p6, %p775_p10 }
  0x3e   : > { %783 = shalt.err (!%p780_p12)
}
  0x3f   : > { %s784_s26 = scalar_lea.vmem %s195_s5, 128  ;;  %s873_s24 = smov [#allocation2]  }
  0x40   : > { %p785_p7 = scmp.ne.s32.totalorder %s195_s5, %s784_s26  ;;  %s789_s27 = sshll.u32 %s873_s24, 4  ;;  %s790_s27 = int_to_ptr.vmem [resolvable:$false] %s789_s27 }
  0x41   : > { %s791_s28 = scalar_lea.vmem %s790_s27, 256  ;;  %p792_p13 = scmp.lt.s32.totalorder %s195_s5, %s790_s27 }
  0x42   : > { %p787_p9 = pnand %p785_p7, %p773_p0  ;;  %p793_p5 = scmp.lt.s32.totalorder %s791_s28, %s784_s26 }
  0x44   : > { %p788_p3 = pneg %p787_p9  ;;  %p794_p4 = por %p793_p5, %p792_p13 }
  0x46   : > { %p795_p8 = pnand %p794_p4, %p788_p3 }
  0x48   : > { %798 = shalt.err (!%p795_p8)
}
  0x49   : > { %670 = dma.hbm_to_vmem [thread:$0]  (!%p999_p11), %s997_s29, 128, %s195_s5, %s184_s7  }
  0x4a   : > { %p1139_p10 = scmp.ne.s32.totalorder %s1134_s23, 0 }
  0x4b   : > { %s1020_s30 = sand.u32 (!%p1139_p10), 1, %s859_s16   ;;  %p1140_p4 = scmp.ne.s32.totalorder (!%p1139_p10), %s1132_s21, 0 }
  0x4c   : > { %203 = sbr.rel (%p1139_p10) target bundleno = 523 (0x20b), region = 36  ;;  %s535_s8 = sshll.u32 (!%p1139_p10), %s1020_s30, 3 }
  0x4d   : > { %s206_s9 = scalar_lea.sflag (!%p1139_p10), [#allocation3], %s1020_s30  ;;  %s1026_s10 = scalar_lea.vmem (!%p1139_p10), [#allocation2], %s535_s8 }
  0x51   : > { %842 = dma.done.wait (%p1140_p4), %s206_s9, 128  }
  0x52   : > { %844 = vsyncadd (%p1140_p4), %s206_s9, 4294967168  ;;  %p1141_p8 = scmp.eq.s32.totalorder %s923_s19, 0 }
  0x54   : > { %846 = dma.done.wait (%p1141_p8), [#allocation6], 4096   ;;  %p1142_p3 = pmov %p1141_p8 }
  0x55   : > { %v874_v0 = vmov 0.0   ;;  %vm875_vm0 = vmmov 0   ;;  %v258_v1 = vld [vmem:[#allocation5 + $0x78] sm:$0xff]  ;;  %v257_v2 = vld [vmem:[#allocation5 + $0x70] sm:$0xff]  ;;  %v256_v3 = vld [vmem:[#allocation5 + $0x68] sm:$0xff]  ;;  %s241_s29 = scalar_lea.vmem [#allocation8], %s535_s8 }
  0x56   : > { %848 = vsyncadd (%p1142_p3), [#allocation6], 4294963200  ;;  %578 = vmatprep.subr.mxu0 %v874_v0  ;;  %610 = vmatprep.mubr.msk.f32.mxu0 %vm875_vm0, %v874_v0  ;;  %v255_v4 = vld [vmem:[#allocation5 + $0x60] sm:$0xff]  ;;  %v352_v5 = vld [vmem:[#allocation7 + $0x78] sm:$0xff]  ;;  %s438_s5 = sshll.u32 %s241_s29, 4  ;;  %s541_s6 = sshll.u32 %s923_s19, 7  ;;  %s1077_s5 = int_to_ptr.vmem [resolvable:$true] %s438_s5 }
  0x57   : > { %613 = vmatprep.subr.mxu1 %v874_v0  ;;  %645 = vmatprep.mubr.msk.f32.mxu1 %vm875_vm0, %v874_v0  ;;  %v254_v6 = vld [vmem:[#allocation5 + $0x58] sm:$0xff]  ;;  %v351_v7 = vld [vmem:[#allocation7 + $0x70] sm:$0xff]  ;;  %v350_v8 = vld [vmem:[#allocation7 + $0x68] sm:$0xff]  ;;  %s1082_s13 = scalar_lea.hbm %s1127_s4, %s541_s6  ;;  %s425_s25 = scalar_lea.sflag [#allocation4], %s1020_s30 }
  0x58   : > { %579 = vmatpush3.msra.mxu0 %v258_v1  ;;  %614 = vmatpush3.msra.mxu1 %v352_v5  ;;  %v253_v9 = vld [vmem:[#allocation5 + $0x50] sm:$0xff]  ;;  %v349_v10 = vld [vmem:[#allocation7 + $0x60] sm:$0xff]  ;;  %v252_v11 = vld [vmem:[#allocation5 + $0x48] sm:$0xff]  ;;  %s799_s26 = scalar_lea.vmem %s1077_s5, 128  ;;  %p1143_p0 = scmp.ne.s32.totalorder %s1137_s14, 0 }
  0x59   : > { %580 = vmatprep.subr.mxu0 %v874_v0  ;;  %615 = vmatprep.subr.mxu1 %v874_v0  ;;  %v348_v12 = vld [vmem:[#allocation7 + $0x58] sm:$0xff]  ;;  %v251_v13 = vld [vmem:[#allocation5 + $0x40] sm:$0xff]  ;;  %v347_v14 = vld [vmem:[#allocation7 + $0x50] sm:$0xff]  ;;  %p800_p11 = scmp.ne.s32.totalorder %s1077_s5, %s799_s26  ;;  %s876_s19 = smov [#allocation8]  }
  0x5a   : > { %581 = vmatpush3.msra.mxu0 %v257_v2  ;;  %616 = vmatpush3.msra.mxu1 %v351_v7  ;;  %v250_v15 = vld [vmem:[#allocation5 + $0x38] sm:$0xff]  ;;  %v346_v16 = vld [vmem:[#allocation7 + $0x48] sm:$0xff]  ;;  %v249_v17 = vld [vmem:[#allocation5 + $0x30] sm:$0xff]  ;;  %s803_s24 = sshll.u32 %s876_s19, 4  ;;  %s804_s24 = int_to_ptr.vmem [resolvable:$false] %s803_s24 }
  0x5b   : > { %582 = vmatprep.subr.mxu0 %v874_v0  ;;  %617 = vmatprep.subr.mxu1 %v874_v0  ;;  %v345_v18 = vld [vmem:[#allocation7 + $0x40] sm:$0xff]  ;;  %v248_v19 = vld [vmem:[#allocation5 + $0x28] sm:$0xff]  ;;  %v344_v20 = vld [vmem:[#allocation7 + $0x38] sm:$0xff]  ;;  %p801_p1 = pnand %p800_p11, %p1143_p0  ;;  %s805_s27 = scalar_lea.vmem %s804_s24, 256 }
  0x5c   : > { %583 = vmatpush3.msra.mxu0 %v256_v3  ;;  %618 = vmatpush3.msra.mxu1 %v350_v8  ;;  %v247_v21 = vld [vmem:[#allocation5 + $0x20] sm:$0xff]  ;;  %v343_v22 = vld [vmem:[#allocation7 + $0x30] sm:$0xff]  ;;  %v246_v23 = vld [vmem:[#allocation5 + $0x18] sm:$0xff]  ;;  %p806_p6 = scmp.lt.s32.totalorder %s1077_s5, %s804_s24  ;;  %p807_p12 = scmp.lt.s32.totalorder %s805_s27, %s799_s26 }
  0x5d   : > { %584 = vmatprep.subr.mxu0 %v874_v0  ;;  %619 = vmatprep.subr.mxu1 %v874_v0  ;;  %v342_v24 = vld [vmem:[#allocation7 + $0x28] sm:$0xff]  ;;  %v245_v25 = vld [vmem:[#allocation5 + $0x10] sm:$0xff]  ;;  %v341_v26 = vld [vmem:[#allocation7 + $0x20] sm:$0xff]  ;;  %p802_p2 = pneg %p801_p1 }
  0x5e   : > { %585 = vmatpush3.msra.mxu0 %v255_v4  ;;  %620 = vmatpush3.msra.mxu1 %v349_v10  ;;  %v244_v27 = vld [vmem:[#allocation5 + $0x8] sm:$0xff]  ;;  %v340_v28 = vld [vmem:[#allocation7 + $0x18] sm:$0xff]  ;;  %v243_v29 = vld [vmem:[#allocation5] sm:$0xff]  ;;  %p808_p7 = por %p807_p12, %p806_p6 }
  0x5f   : > { %586 = vmatprep.subr.mxu0 %v874_v0  ;;  %621 = vmatprep.subr.mxu1 %v874_v0  ;;  %v242_v30 = vld [vmem:[%s1026_s10] sm:$0xff]  ;;  %v338_v32 = vld [vmem:[#allocation7 + $0x8] sm:$0xff]  ;;  %v337_v33 = vld [vmem:[#allocation7] sm:$0xff] }
  0x60   : > { %587 = vmatpush3.msra.mxu0 %v254_v6  ;;  %622 = vmatpush3.msra.mxu1 %v348_v12  ;;  %v339_v31 = vld [vmem:[#allocation7 + $0x10] sm:$0xff]  ;;  %p809_p9 = pnand %p808_p7, %p802_p2 }
  0x61   : > { %588 = vmatprep.subr.mxu0 %v874_v0  ;;  %623 = vmatprep.subr.mxu1 %v874_v0  ;;  %v539_v34 = vld [vmem:[%s1125_s2] ss:$0 sm:$0xff] }
  0x62   : > { %589 = vmatpush3.msra.mxu0 %v253_v9  ;;  %624 = vmatpush3.msra.mxu1 %v347_v14 }
  0x63   : > { %590 = vmatprep.subr.mxu0 %v874_v0  ;;  %625 = vmatprep.subr.mxu1 %v874_v0 }
  0x64   : > { %591 = vmatpush3.msra.mxu0 %v252_v11  ;;  %626 = vmatpush3.msra.mxu1 %v346_v16 }
  0x65   : > { %592 = vmatprep.subr.mxu0 %v874_v0  ;;  %627 = vmatprep.subr.mxu1 %v874_v0 }
  0x66   : > { %593 = vmatpush3.msra.mxu0 %v251_v13  ;;  %628 = vmatpush3.msra.mxu1 %v345_v18 }
  0x67   : > { %594 = vmatprep.subr.mxu0 %v874_v0  ;;  %629 = vmatprep.subr.mxu1 %v874_v0 }
  0x68   : > { %595 = vmatpush3.msra.mxu0 %v250_v15  ;;  %630 = vmatpush3.msra.mxu1 %v344_v20 }
  0x69   : > { %596 = vmatprep.subr.mxu0 %v874_v0  ;;  %631 = vmatprep.subr.mxu1 %v874_v0 }
  0x6a   : > { %597 = vmatpush3.msra.mxu0 %v249_v17  ;;  %632 = vmatpush3.msra.mxu1 %v343_v22 }
  0x6b   : > { %598 = vmatprep.subr.mxu0 %v874_v0  ;;  %633 = vmatprep.subr.mxu1 %v874_v0 }
  0x6c   : > { %599 = vmatpush3.msra.mxu0 %v248_v19  ;;  %634 = vmatpush3.msra.mxu1 %v342_v24 }
  0x6d   : > { %600 = vmatprep.subr.mxu0 %v874_v0  ;;  %635 = vmatprep.subr.mxu1 %v874_v0 }
  0x6e   : > { %601 = vmatpush3.msra.mxu0 %v247_v21  ;;  %636 = vmatpush3.msra.mxu1 %v341_v26 }
  0x6f   : > { %602 = vmatprep.subr.mxu0 %v874_v0  ;;  %637 = vmatprep.subr.mxu1 %v874_v0 }
  0x70   : > { %603 = vmatpush3.msra.mxu0 %v246_v23  ;;  %638 = vmatpush3.msra.mxu1 %v340_v28 }
  0x71   : > { %604 = vmatprep.subr.mxu0 %v874_v0  ;;  %639 = vmatprep.subr.mxu1 %v874_v0 }
  0x72   : > { %605 = vmatpush3.msra.mxu0 %v245_v25  ;;  %640 = vmatpush3.msra.mxu1 %v339_v31 }
  0x73   : > { %606 = vmatprep.subr.mxu0 %v874_v0  ;;  %641 = vmatprep.subr.mxu1 %v874_v0 }
  0x74   : > { %607 = vmatpush3.msra.mxu0 %v244_v27  ;;  %642 = vmatpush3.msra.mxu1 %v338_v32 }
  0x75   : > { %608 = vmatprep.subr.mxu0 %v874_v0  ;;  %643 = vmatprep.subr.mxu1 %v874_v0 }
  0x76   : > { %609 = vmatpush3.msra.mxu0 %v243_v29  ;;  %644 = vmatpush3.msra.mxu1 %v337_v33 }
  0x77   : > { %611 = vmatmul.mubr.f32.vlgmr.msra.gmra.mxu0 %v242_v30 }
 0x137   : > { %v332_v35 = vpop.f32.mrf.mxu0 }
 0x138   : > { %v333_v36 = vadd.f32 %v539_v34, %v332_v35 }
 0x139   : > { %v612_v37 = vpop.f32.mrf.mxu0 }
 0x13a   : > { %v336_v38 = vmax.f32 %v333_v36, 0.0 }
 0x13c   : > { %646 = vmatmul.mubr.f32.vlgmr.msra.gmra.mxu1 %v336_v38 }
 0x1fc   : > { %v419_v39 = vpop.f32.mrf.mxu1 }
 0x1fd   : > { %423 = vst [vmem:[%s241_s29] sm:$0xff] %v419_v39 }
 0x1fe   : > { %v647_v40 = vpop.f32.mrf.mxu1 }
 0x1ff   : > { %812 = shalt.err (!%p809_p9)
}
 0x200   : > { %s813_s28 = scalar_lea.hbm %s1082_s13, 128  ;;  %s817_s9 = scalar_lea.hbm %s1127_s4, 256 }
 0x201   : > { %p814_p13 = scmp.ne.s32.totalorder %s1082_s13, %s813_s28  ;;  %p818_p4 = scmp.lt.s32.totalorder %s1082_s13, %s1127_s4 }
 0x202   : > { %p819_p8 = scmp.lt.s32.totalorder %s817_s9, %s813_s28 }
 0x203   : > { %p815_p5 = pnand %p814_p13, %p1143_p0 }
 0x204   : > { %p820_p3 = por %p819_p8, %p818_p4 }
 0x205   : > { %p816_p10 = pneg %p815_p5 }
 0x207   : > { %p821_p11 = pnand %p820_p3, %p816_p10 }
 0x209   : > { %824 = shalt.err (!%p821_p11)
}
 0x20a   : > { %658 = dma.vmem_to_hbm [thread:$0]  (%p1143_p0), %s1077_s5, 128, %s1082_s13, %s425_s25  }
 0x20b PF: > { %s450_s23 = sand.u32 1, %s855_s15   ;;  %p1144_p1 = scmp.ne.s32.totalorder %s1133_s22, 0 }
 0x20c   : > { %p1145_p2 = scmp.ge.s32.totalorder %s867_s18, 2  ;;  %s451_s29 = scalar_lea.sflag [#allocation4], %s450_s23 }
 0x20e   : > { %p672_p6 = pnand %p1145_p2, %p1144_p1 }
 0x210   : > { %p673_p12 = pneg %p672_p6 }
 0x212   : > { %850 = dma.done.wait (%p673_p12), %s451_s29, 128  }
 0x213   : > { %852 = vsyncadd (%p673_p12), %s451_s29, 4294967168  ;;  %p18_p7 = scmp.ge.s32.totalorder %s974_s11, 4   ;;  %s1146_s15 = smov %s859_s16 }
 0x214   : > { %s1147_s16 = smov %s863_s17  ;;  %s1148_s17 = smov %s990_s20 }
 0x215   : > { %s1149_s18 = smov %s974_s11  ;;  %20 = sbr.rel (!%p18_p7) target bundleno = 6 (0x6), region = 89 }
 0x21a   :  { %456 = vsyncpa [#allocation3], 1 }
 0x21b   :  { %458 = vsyncpa [#allocation3 + $0x1], 1 }
 0x21c   :  { %459 = vsyncpa [#allocation6], 1 }
 0x21d   :  { %460 = vsyncpa [#allocation4], 1 }
 0x21e   :  { %462 = vsyncpa [#allocation4 + $0x1], 1 }

</bundles_post_ra>
